<compile_context>
chip_gen: v7x
topology: tpu7x:2x2x1
jax: 0.10.0
libtpu: 0.0.40
codegen_flags: <defaults>
</compile_context>

<pallas_src>
import jax
import jax.numpy as jnp
from jax.experimental import pallas as pl
from jax.experimental.pallas import tpu as pltpu


# ----------------------------------------------------------------------------
# Pallas kernel: one batch element per grid step, fully fused SE.
# ----------------------------------------------------------------------------
def _se_kernel(x_ref, w1_ref, w2_ref, o_ref):
    # x_ref : (1, C, HW)   one batch element, spatial flattened on the lane axis
    # w1_ref: (Chid, C)    fc1 weight (nn.Linear layout: out x in), no bias
    # w2_ref: (C, Chid)    fc2 weight (out x in), no bias
    # o_ref : (1, C, HW)
    x = x_ref[0]                                           # (C, HW) f32
    hw = x.shape[1]

    # Global average pool over spatial (lane-axis reduce on the XLU).
    pooled = jnp.sum(x, axis=1, keepdims=True) * (1.0 / float(hw))   # (C, 1)

    # fc1 -> ReLU -> fc2 -> sigmoid   (tiny matmuls, f32 accumulation)
    hid = jnp.maximum(
        jnp.dot(w1_ref[...], pooled, preferred_element_type=jnp.float32), 0.0
    )                                                      # (Chid, 1)
    gate = jax.nn.sigmoid(
        jnp.dot(w2_ref[...], hid, preferred_element_type=jnp.float32)
    )                                                      # (C, 1)

    # Channel-wise rescale, broadcast over the lane (spatial) axis.
    o_ref[0] = (x * gate).astype(o_ref.dtype)


# ----------------------------------------------------------------------------
# Wrapper: NCHW in / NCHW out (reshape to (N, C, H*W) is pure layout plumbing).
# ----------------------------------------------------------------------------
def se_forward(x_nchw, fc1_w, fc2_w):
    N, C, H, W = x_nchw.shape
    HW = H * W
    Chid = fc1_w.shape[0]
    assert fc1_w.shape == (Chid, C) and fc2_w.shape == (C, Chid)

    x2 = x_nchw.reshape(N, C, HW)

    out = pl.pallas_call(
        _se_kernel,
        out_shape=jax.ShapeDtypeStruct((N, C, HW), x_nchw.dtype),
        grid_spec=pltpu.PrefetchScalarGridSpec(
            num_scalar_prefetch=0,
            grid=(N,),
            in_specs=[
                pl.BlockSpec((1, C, HW), lambda n: (n, 0, 0)),
                pl.BlockSpec((Chid, C), lambda n: (0, 0)),
                pl.BlockSpec((C, Chid), lambda n: (0, 0)),
            ],
            out_specs=pl.BlockSpec((1, C, HW), lambda n: (n, 0, 0)),
        ),
        compiler_params=pltpu.CompilerParams(
            dimension_semantics=("parallel",),
            vmem_limit_bytes=64 * 1024 * 1024,
        ),
    )(x2, fc1_w, fc2_w)

    return out.reshape(N, C, H, W)


# ----------------------------------------------------------------------------
# Pure-JAX reference (mirrors the PyTorch module exactly) for verification.
# ----------------------------------------------------------------------------
def reference_forward(x, fc1_w, fc2_w):
    pooled = jnp.mean(x, axis=(2, 3))                      # (N, C)
    h = jax.nn.relu(pooled @ fc1_w.T)                      # (N, Chid)
    gate = jax.nn.sigmoid(h @ fc2_w.T)                     # (N, C)
    return x * gate[:, :, None, None]


if __name__ == "__main__":
    # Small shapes consistent with the module (reduction_rate=16 requires
    # in_channels >= 16 for a non-degenerate hidden dim).
    N, C, H, W = 2, 64, 16, 16
    reduction_rate = 16
    Chid = C // reduction_rate

    key = jax.random.PRNGKey(0)
    kx, k1, k2 = jax.random.split(key, 3)
    x = jax.random.normal(kx, (N, C, H, W), jnp.float32)

    # nn.Linear default init (kaiming-uniform style bounds), bias=False.
    b1 = 1.0 / float(C) ** 0.5
    fc1_w = jax.random.uniform(k1, (Chid, C), jnp.float32, -b1, b1)
    b2 = 1.0 / float(Chid) ** 0.5
    fc2_w = jax.random.uniform(k2, (C, Chid), jnp.float32, -b2, b2)

    out = se_forward(x, fc1_w, fc2_w)
    out = jax.block_until_ready(out)

    ref = reference_forward(x, fc1_w, fc2_w)
    assert out.shape == (N, C, H, W), out.shape
    max_err = float(jnp.max(jnp.abs(out - ref)))
    assert jnp.allclose(out, ref, atol=1e-4, rtol=1e-4), max_err

    print("KERNEL_OK")
</pallas_src>

<mosaic_0001>
module attributes {stable_mosaic.version = 11 : i64} {
  func.func @_se_kernel(%arg0: i32, %arg1: memref<1x64x256xf32, #tpu.memory_space<vmem>>, %arg2: memref<4x64xf32, #tpu.memory_space<vmem>>, %arg3: memref<64x4xf32, #tpu.memory_space<vmem>>, %arg4: memref<1x64x256xf32, #tpu.memory_space<vmem>>) attributes {dimension_semantics = [#tpu.dimension_semantics<parallel>], iteration_bounds = array<i64: 2>, scalar_prefetch = 0 : i64, scratch_operands = 0 : i64, tpu.core_type = #tpu.core_type<tc>, window_params = [{transform_indices = @transform_0, window_bounds = array<i64: 1, 64, 256>}, {pipeline_mode = #tpu.pipeline_mode<synchronous>, transform_indices = @transform_1, window_bounds = array<i64: 4, 64>}, {pipeline_mode = #tpu.pipeline_mode<synchronous>, transform_indices = @transform_2, window_bounds = array<i64: 64, 4>}, {transform_indices = @transform_3, window_bounds = array<i64: 1, 64, 256>}]} {
    %c0 = arith.constant 0 : index
    %c0_0 = arith.constant 0 : index
    %c0_1 = arith.constant 0 : index
    %0 = vector.load %arg1[%c0, %c0_0, %c0_1] : memref<1x64x256xf32, #tpu.memory_space<vmem>>, vector<1x64x256xf32>
    %1 = vector.shape_cast %0 : vector<1x64x256xf32> to vector<64x256xf32>
    %cst = arith.constant dense<0.000000e+00> : vector<64xf32>
    %2 = vector.multi_reduction <add>, %1, %cst [1] : vector<64x256xf32> to vector<64xf32>
    %3 = vector.shape_cast %2 : vector<64xf32> to vector<64x1xf32>
    %cst_2 = arith.constant 3.906250e-03 : f32
    %4 = vector.broadcast %cst_2 : f32 to vector<64x1xf32>
    %5 = arith.mulf %3, %4 : vector<64x1xf32>
    %c0_3 = arith.constant 0 : index
    %c0_4 = arith.constant 0 : index
    %6 = vector.load %arg2[%c0_3, %c0_4] : memref<4x64xf32, #tpu.memory_space<vmem>>, vector<4x64xf32>
    %cst_5 = arith.constant dense<0.000000e+00> : vector<4x1xf32>
    %7 = tpu.matmul %6, %5, %cst_5 {dimension_numbers = #tpu.dot_dimension_numbers<[1], [0], [0], [1], [0, 0, 1, 1], [], []>} : vector<4x64xf32>, vector<64x1xf32>, vector<4x1xf32> -> vector<4x1xf32>
    %cst_6 = arith.constant 0.000000e+00 : f32
    %8 = vector.broadcast %cst_6 : f32 to vector<4x1xf32>
    %9 = arith.maximumf %7, %8 : vector<4x1xf32>
    %c0_7 = arith.constant 0 : index
    %c0_8 = arith.constant 0 : index
    %10 = vector.load %arg3[%c0_7, %c0_8] : memref<64x4xf32, #tpu.memory_space<vmem>>, vector<64x4xf32>
    %cst_9 = arith.constant dense<0.000000e+00> : vector<64x1xf32>
    %11 = tpu.matmul %10, %9, %cst_9 {dimension_numbers = #tpu.dot_dimension_numbers<[1], [0], [0], [1], [0, 0, 1, 1], [], []>} : vector<64x4xf32>, vector<4x1xf32>, vector<64x1xf32> -> vector<64x1xf32>
    %12 = arith.negf %11 : vector<64x1xf32>
    %13 = math.exp %12 : vector<64x1xf32>
    %cst_10 = arith.constant 1.000000e+00 : f32
    %14 = vector.broadcast %cst_10 : f32 to vector<64x1xf32>
    %15 = arith.addf %14, %13 : vector<64x1xf32>
    %16 = arith.divf %14, %15 : vector<64x1xf32>
    %17 = vector.broadcast %16 : vector<64x1xf32> to vector<64x256xf32>
    %18 = arith.mulf %1, %17 : vector<64x256xf32>
    %c0_11 = arith.constant 0 : index
    %c0_12 = arith.constant 0 : index
    %c0_13 = arith.constant 0 : index
    %19 = vector.load %arg4[%c0_11, %c0_12, %c0_13] : memref<1x64x256xf32, #tpu.memory_space<vmem>>, vector<1x64x256xf32>
    %20 = vector.shape_cast %19 : vector<1x64x256xf32> to vector<64x256xf32>
    %21 = vector.shape_cast %18 : vector<64x256xf32> to vector<1x64x256xf32>
    tpu.vector_store %arg4[%c0_11, %c0_12, %c0_13], %21 {strides = array<i32>} : memref<1x64x256xf32, #tpu.memory_space<vmem>>, vector<1x64x256xf32>,
    return
  }
  func.func @transform_0(%arg0: i32) -> (i32, i32, i32) {
    %c0_i32 = arith.constant 0 : i32
    %c0_i32_0 = arith.constant 0 : i32
    %c0_i32_1 = arith.constant 0 : i32
    return %arg0, %c0_i32, %c0_i32_0 : i32, i32, i32
  }
  func.func @transform_1(%arg0: i32) -> (i32, i32) {
    %c0_i32 = arith.constant 0 : i32
    %c0_i32_0 = arith.constant 0 : i32
    %c0_i32_1 = arith.constant 0 : i32
    return %c0_i32, %c0_i32_0 : i32, i32
  }
  func.func @transform_2(%arg0: i32) -> (i32, i32) {
    %c0_i32 = arith.constant 0 : i32
    %c0_i32_0 = arith.constant 0 : i32
    %c0_i32_1 = arith.constant 0 : i32
    return %c0_i32, %c0_i32_0 : i32, i32
  }
  func.func @transform_3(%arg0: i32) -> (i32, i32, i32) {
    %c0_i32 = arith.constant 0 : i32
    %c0_i32_0 = arith.constant 0 : i32
    %c0_i32_1 = arith.constant 0 : i32
    return %arg0, %c0_i32, %c0_i32_0 : i32, i32, i32
  }
}

</mosaic_0001>

<bundles_post_ra>
// kernel: tpu_custom_call.1
= control target key start
LH: loop header
LB: loop body
LE: loop exit
PB: predicated region body
PF: predicated region fallthrough
CT: control target
= control target key end

     0   :  { %8 = vsyncpa [#allocation3], 0  ;;  %s1438_s0 = inlined_call_operand.hbm [shape: f32[2,64,256], index: 0, kind: input, shape index: {}]   ;;  %s1439_s1 = inlined_call_operand.hbm [shape: f32[4,64], index: 1, kind: input, shape index: {}]   ;;  %s1440_s2 = inlined_call_operand.hbm [shape: f32[64,4], index: 2, kind: input, shape index: {}]   ;;  %s1441_s3 = inlined_call_operand.hbm [shape: f32[2,64,256], index: 3, kind: output, shape index: {}]  }
   0x1   :  { %10 = vsyncpa [#allocation3 + $0x1], 0 }
   0x2   :  { %11 = vsyncpa [#allocation6], 0 }
   0x3   :  { %12 = vsyncpa [#allocation4], 0 }
   0x4   :  { %14 = vsyncpa [#allocation4 + $0x1], 0  ;;  %s1112_s12 = smov 0   ;;  %s1114_s13 = smov 0  }
   0x5   :  { %s1116_s14 = smov 0   ;;  %s1118_s15 = smov 0  }
   0x6 LB: > { %s1133_s16 = sadd.s32 4294967295, %s1076_s15   ;;  %s708_s17 = sadd.s32 4294967294, %s1076_s15   ;;  %s1076_s15 = sphi %s1118_s15, %s1466_s15   ;;  %s1072_s14 = sphi %s1116_s14, %s1465_s14   ;;  %s1068_s13 = sphi %s1114_s13, %s1464_s13   ;;  %s1064_s12 = sphi %s1112_s12, %s1463_s12  }
   0x7   : > { %s1137_s18 = sadd.s32 1, %s1076_s15   ;;  %s27_s19 = sadd.s32 1, %s1072_s14 }
   0x8   : > { %s24_s20 = ssub.s32 %s1076_s15, %s1137_s18  ;;  %p34_p0 = scmp.ne.s32.totalorder %s1072_s14, %s1068_s13 }
   0x9   : > { %p25_p1 = scmp.eq.s32.totalorder %s24_s20, 0  ;;  %p35_p2 = scmp.eq.s32.totalorder %s1076_s15, 0 }
   0xa   : > { %p40_p3 = scmp.ne.s32.totalorder %s1068_s13, %s1064_s12  ;;  %p1442_p4 = scmp.eq.s32.totalorder %s1133_s16, 0 }
   0xb   : > { %s1149_s21 = scalar_select %p25_p1, %s1072_s14, %s27_s19  }
   0xc   : > { %p1151_p5 = por %p35_p2, %p34_p0  ;;  %p1157_p6 = por %p1442_p4, %p40_p3 }
   0xd   : > { %p106_p7 = scmp.eq.s32.totalorder %s1133_s16, 1  ;;  %p112_p8 = scmp.eq.s32.totalorder %s708_s17, 1 }
   0xe   : > { %s1448_s23 = scalar_select %p1157_p6, 1, 0 }
   0xf   : > { %p709_p9 = scmp.ge.s32.totalorder %s1076_s15, 1  ;;  %p119_p10 = scmp.lt.s32.totalorder %s1076_s15, 3 }
  0x10   : > { %p1164_p11 = por %p106_p7, %p34_p0  ;;  %p1168_p12 = por %p112_p8, %p40_p3 }
  0x11   : > { %p1172_p13 = pnand %p709_p9, %p119_p10  ;;  %s1078_s27 = smov [#allocation5]  }
  0x12   : > { %s1449_s24 = scalar_select %p1164_p11, 1, 0 }
  0x13   : > { %s1450_s25 = scalar_select %p1168_p12, 1, 0 }
  0x14   : > { %s1451_s26 = scalar_select %p1172_p13, 1, 0 }
  0x15   : > { %p821_p2 = pneg %p1172_p13  ;;  %s132_s28 = sshll.u32 %s1078_s27, 4  ;;  %s133_s28 = int_to_ptr.vmem [resolvable:$true] %s132_s28 }
  0x16   : > { %p838_p4 = scmp.lt.s32.totalorder %s1076_s15, 2  ;;  %p1452_p0 = scmp.eq.s32.totalorder %s1133_s16, 0 }
  0x17   : > { %s1079_s4 = smov [#allocation7]   ;;  %s920_s8 = scalar_lea.hbm %s1439_s1, 64 }
  0x18   : > { %p1182_p7 = pnand %p821_p2, %p1452_p0  ;;  %p1188_p3 = pnand %p838_p4, %p1151_p5 }
  0x19   : > { %s142_s5 = sshll.u32 %s1079_s4, 4  ;;  %p921_p8 = scmp.ne.s32.totalorder %s1439_s1, %s920_s8  ;;  %s1192_s5 = int_to_ptr.vmem [resolvable:$true] %s142_s5 }
  0x1a   : > { %s1454_s30 = scalar_select %p1188_p3, 1, 0 }
  0x1b   : > { %p922_p9 = pneg %p1182_p7  ;;  %p927_p10 = scmp.lt.u32.totalorder %s920_s8, %s1439_s1 }
  0x1d   : > { %p923_p4 = pnand %p922_p9, %p921_p8 }
  0x1f   : > { %p924_p5 = pneg %p923_p4 }
  0x21   : > { %p929_p2 = pnand %p927_p10, %p924_p5 }
  0x23   : > { %932 = shalt.err (!%p929_p2)
}
  0x24   : > { %s933_s19 = scalar_lea.vmem %s133_s28, 64  ;;  %p941_p11 = scmp.lt.s32.totalorder %s133_s28, %s133_s28 }
  0x25   : > { %p934_p0 = scmp.ne.s32.totalorder %s133_s28, %s933_s19  ;;  %p942_p6 = scmp.lt.s32.totalorder %s933_s19, %s933_s19 }
  0x27   : > { %p936_p1 = pnand %p934_p0, %p922_p9  ;;  %p943_p13 = por %p942_p6, %p941_p11 }
  0x29   : > { %p937_p12 = pneg %p936_p1 }
  0x2b   : > { %p944_p3 = pnand %p943_p13, %p937_p12 }
  0x2d   : > { %947 = shalt.err (!%p944_p3)
}
  0x2e   : > { %824 = dma.hbm_to_vmem [thread:$0]  (!%p1182_p7), %s1439_s1, 64, %s133_s28, [#allocation6]  }
  0x2f   : > { %s156_s27 = sand.u32 1, %s1072_s14   ;;  %s948_s7 = scalar_lea.hbm %s1440_s2, 1024 }
  0x30   : > { %p949_p1 = scmp.ne.s32.totalorder %s1440_s2, %s948_s7  ;;  %p955_p12 = scmp.lt.u32.totalorder %s948_s7, %s1440_s2 }
  0x32   : > { %p951_p6 = pnand %p949_p1, %p922_p9 }
  0x34   : > { %p952_p11 = pneg %p951_p6 }
  0x36   : > { %p957_p13 = pnand %p955_p12, %p952_p11 }
  0x38   : > { %960 = shalt.err (!%p957_p13)
}
  0x39   : > { %s961_s28 = scalar_lea.vmem %s1192_s5, 1024  ;;  %p969_p5 = scmp.lt.s32.totalorder %s1192_s5, %s1192_s5 }
  0x3a   : > { %p962_p3 = scmp.ne.s32.totalorder %s1192_s5, %s961_s28  ;;  %p970_p10 = scmp.lt.s32.totalorder %s961_s28, %s961_s28 }
  0x3c   : > { %p964_p8 = pnand %p962_p3, %p922_p9  ;;  %p971_p2 = por %p970_p10, %p969_p5 }
  0x3e   : > { %p965_p4 = pneg %p964_p8 }
  0x40   : > { %p972_p0 = pnand %p971_p2, %p965_p4 }
  0x42   : > { %975 = shalt.err (!%p972_p0)
}
  0x43   : > { %s1080_s17 = smov 128   ;;  %s1081_s19 = smov 8  }
  0x44   : > { %827 = dma.hbm_to_vmem [thread:$0]  (!%p1182_p7), %s1440_s2, 1024, %s1192_s5, [#allocation6], %s1080_s17, %s1080_s17, %s1081_s19  }
  0x45   : > { %s713_s4 = sshll.u32 %s156_s27, 7  ;;  %s744_s6 = sshll.u32 %s1076_s15, 11 }
  0x46   : > { %s1246_s9 = scalar_lea.hbm %s1438_s0, %s744_s6  ;;  %s160_s10 = scalar_lea.vmem [#allocation2], %s713_s4 }
  0x47   : > { %s167_s11 = sshll.u32 %s160_s10, 4  ;;  %s1250_s29 = scalar_lea.sflag [#allocation3], %s156_s27  ;;  %s1248_s11 = int_to_ptr.vmem [resolvable:$true] %s167_s11 }
  0x48   : > { %s976_s28 = scalar_lea.hbm %s1246_s9, 2048  ;;  %p1455_p7 = scmp.ne.s32.totalorder %s1454_s30, 0 }
  0x49   : > { %p977_p9 = scmp.ne.s32.totalorder %s1246_s9, %s976_s28  ;;  %s981_s19 = scalar_lea.hbm %s1438_s0, 4096 }
  0x4a   : > { %p978_p1 = pneg %p1455_p7  ;;  %p982_p12 = scmp.lt.u32.totalorder %s1246_s9, %s1438_s0 }
  0x4b   : > { %p983_p13 = scmp.lt.u32.totalorder %s981_s19, %s976_s28  ;;  %p985_p8 = scmp.lt.u32.totalorder %s976_s28, %s1246_s9 }
  0x4c   : > { %p979_p6 = pnand %p978_p1, %p977_p9 }
  0x4d   : > { %p984_p3 = por %p983_p13, %p982_p12 }
  0x4e   : > { %p980_p11 = pneg %p979_p6 }
  0x4f   : > { %p986_p4 = por %p985_p8, %p984_p3 }
  0x51   : > { %p987_p5 = pnand %p986_p4, %p980_p11 }
  0x53   : > { %990 = shalt.err (!%p987_p5)
}
  0x54   : > { %s991_s27 = scalar_lea.vmem %s1248_s11, 2048  ;;  %s1082_s4 = smov [#allocation2]  }
  0x55   : > { %p992_p10 = scmp.ne.s32.totalorder %s1248_s11, %s991_s27  ;;  %s996_s6 = sshll.u32 %s1082_s4, 4  ;;  %s997_s6 = int_to_ptr.vmem [resolvable:$false] %s996_s6 }
  0x56   : > { %s998_s7 = scalar_lea.vmem %s997_s6, 4096  ;;  %p999_p9 = scmp.lt.s32.totalorder %s1248_s11, %s997_s6 }
  0x57   : > { %p994_p2 = pnand %p992_p10, %p978_p1  ;;  %p1000_p6 = scmp.lt.s32.totalorder %s998_s7, %s991_s27 }
  0x59   : > { %p995_p0 = pneg %p994_p2  ;;  %p1001_p12 = por %p1000_p6, %p999_p9 }
  0x5b   : > { %p1002_p13 = pnand %p1001_p12, %p995_p0 }
  0x5d   : > { %1005 = shalt.err (!%p1002_p13)
}
  0x5e   : > { %s1083_s8 = smov 256   ;;  %s1084_s10 = smov 16  }
  0x5f   : > { %831 = dma.hbm_to_vmem [thread:$0]  (!%p1455_p7), %s1246_s9, 2048, %s1248_s11, %s1250_s29, %s1083_s8, %s1083_s8, %s1084_s10  }
  0x60   : > { %p1456_p1 = scmp.ne.s32.totalorder %s1451_s26, 0 }
  0x61   : > { %s1281_s28 = sand.u32 (!%p1456_p1), 1, %s1068_s13   ;;  %p1457_p11 = scmp.ne.s32.totalorder (!%p1456_p1), %s1448_s23, 0 }
  0x62   : > { %179 = sbr.rel (%p1456_p1) target bundleno = 901 (0x385), region = 32  ;;  %s717_s5 = sshll.u32 (!%p1456_p1), %s1281_s28, 7 }
  0x63   : > { %s182_s17 = scalar_lea.sflag (!%p1456_p1), [#allocation3], %s1281_s28  ;;  %s185_s19 = scalar_lea.vmem (!%p1456_p1), [#allocation2], %s717_s5 }
  0x69   : > { %1051 = dma.done.wait (%p1457_p11), %s182_s17, 2048  }
  0x6a   : > { %1053 = vsyncadd (%p1457_p11), %s182_s17, 4294965248  ;;  %p1458_p7 = scmp.eq.s32.totalorder %s1133_s16, 0 }
  0x6c   : > { %1055 = dma.done.wait (%p1458_p7), [#allocation6], 1088   ;;  %p1459_p3 = pmov %p1458_p7 }
  0x6d   : > { %v1295_v0 = vld [vmem:[%s185_s19 + $0x20] sm:$0xff]  ;;  %v1297_v1 = vld [vmem:[%s185_s19 + $0x28] sm:$0xff]  ;;  %v1305_v5 = vld [vmem:[%s185_s19 + $0x30] sm:$0xff]  ;;  %v1085_v24 = vmov 0.0|0.0   ;;  %vm1086_vm0 = vmmov 0   ;;  %v1087_v25 = vmov 0.0  }
  0x6e   : > { %1057 = vsyncadd (%p1459_p3), [#allocation6], 4294966208  ;;  %v1299_v2 = vld [vmem:[%s185_s19] sm:$0xff]  ;;  %v238_v3 = vadd.f32 %v1297_v1, %v1295_v0  ;;  %v1303_v4 = vld [vmem:[%s185_s19 + $0x8] sm:$0xff]  ;;  %797 = vmatprep.subr.bf16.mxu0 %v1085_v24  ;;  %780 = vmatprep.mubr.msk.f32.mxu0 %vm1086_vm0, %v1087_v25  ;;  %vm265_vm1 = vcmask 523264   ;;  %vm348_vm2 = vcmask 31744  }
  0x6f   : > { %v1307_v6 = vld [vmem:[%s185_s19 + $0x38] sm:$0xff]  ;;  %v232_v7 = vadd.f32 %v1303_v4, %v1299_v2  ;;  %v1311_v8 = vld [vmem:[%s185_s19 + $0x10] sm:$0xff]  ;;  %v1323_v14 = vld [vmem:[%s185_s19 + $0x40] sm:$0xff]  ;;  %vm373_vm3 = vcmask 1043456   ;;  %v1088_v58 = vmov 0   ;;  %s1357_s23 = scalar_lea.vmem [#allocation8], %s717_s5 }
  0x70   : > { %v1313_v9 = vld [vmem:[%s185_s19 + $0x18] sm:$0xff]  ;;  %239 = vadd.xlane.f32.xlu1 %v238_v3  ;;  %v241_v10 = vadd.f32 %v1307_v6, %v1305_v5  ;;  %v1319_v12 = vld [vmem:[%s185_s19 + $0x50] sm:$0xff]  ;;  %v1325_v15 = vld [vmem:[%s185_s19 + $0x48] sm:$0xff]  ;;  %886 = vset.pattern.permute.xlu0 %v1088_v58  ;;  %s745_s26 = sshll.u32 %s1133_s16, 11  ;;  %s616_s30 = sshll.u32 %s1357_s23, 4  ;;  %s1390_s30 = int_to_ptr.vmem [resolvable:$true] %s616_s30 }
  0x71   : > { %233 = vadd.xlane.f32.xlu0 %v232_v7  ;;  %v235_v11 = vadd.f32 %v1313_v9, %v1311_v8  ;;  %v1321_v13 = vld [vmem:[%s185_s19 + $0x58] sm:$0xff]  ;;  %v244_v17 = vadd.f32 %v1325_v15, %v1323_v14  ;;  %v1331_v18 = vld [vmem:[%s185_s19 + $0x70] sm:$0xff]  ;;  %v1335_v20 = vld [vmem:[%s185_s19 + $0x60] sm:$0xff]  ;;  %887 = vset.pattern.permute.xlu1 %v1088_v58  ;;  %s1388_s29 = scalar_lea.hbm %s1441_s3, %s745_s26  ;;  %s603_s16 = scalar_lea.sflag [#allocation4], %s1281_s28 }
  0x72   : > { %v247_v16 = vadd.f32 %v1321_v13, %v1319_v12  ;;  %v1333_v19 = vld [vmem:[%s185_s19 + $0x78] sm:$0xff]  ;;  %v1337_v21 = vld [vmem:[%s185_s19 + $0x68] sm:$0xff]  ;;  %v264_v46 = vld [vmem:[#allocation5] sm:$0xf]  ;;  %s1006_s20 = scalar_lea.vmem %s1390_s30, 2048  ;;  %p1460_p4 = scmp.ne.s32.totalorder %s1449_s24, 0 }
  0x73   : > { %v253_v22 = vadd.f32 %v1333_v19, %v1331_v18  ;;  %v250_v23 = vadd.f32 %v1337_v21, %v1335_v20  ;;  %v340_v47 = vld [vmem:[#allocation7] sm:$0xff]  ;;  %v341_v51 = vld [vmem:[#allocation7 + $0x8] sm:$0xff]  ;;  %v342_v52 = vld [vmem:[#allocation7 + $0x10] sm:$0xff]  ;;  %p1007_p8 = scmp.ne.s32.totalorder %s1390_s30, %s1006_s20  ;;  %s1089_s22 = smov [#allocation8]  }
  0x74   : > { %242 = vadd.xlane.f32.xlu1 %v241_v10  ;;  %785 = vmatprep.mubr.msk.f32.mxu1 %vm348_vm2, %v340_v47  ;;  %v343_v53 = vld [vmem:[#allocation7 + $0x18] sm:$0xff]  ;;  %v344_v54 = vld [vmem:[#allocation7 + $0x20] sm:$0xff]  ;;  %v345_v55 = vld [vmem:[#allocation7 + $0x28] sm:$0xff]  ;;  %s1010_s27 = sshll.u32 %s1089_s22, 4  ;;  %s1011_s27 = int_to_ptr.vmem [resolvable:$false] %s1010_s27 }
  0x75   : > { %236 = vadd.xlane.f32.xlu0 %v235_v11  ;;  %v346_v56 = vld [vmem:[#allocation7 + $0x30] sm:$0xff]  ;;  %v347_v57 = vld [vmem:[#allocation7 + $0x38] sm:$0xff]  ;;  %p1008_p5 = pnand %p1007_p8, %p1460_p4  ;;  %s1012_s4 = scalar_lea.vmem %s1011_s27, 4096 }
  0x76   : > { %p1013_p2 = scmp.lt.s32.totalorder %s1390_s30, %s1011_s27  ;;  %p1014_p0 = scmp.lt.s32.totalorder %s1012_s4, %s1006_s20 }
  0x77   : > { %p1009_p10 = pneg %p1008_p5 }
  0x78   : > { %248 = vadd.xlane.f32.xlu1 %v247_v16  ;;  %p1015_p9 = por %p1014_p0, %p1013_p2 }
  0x79   : > { %245 = vadd.xlane.f32.xlu0 %v244_v17 }
  0x7a   : > { %p1016_p6 = pnand %p1015_p9, %p1009_p10 }
  0x7c   : > { %254 = vadd.xlane.f32.xlu1 %v253_v22 }
  0x7d   : > { %251 = vadd.xlane.f32.xlu0 %v250_v23 }
  0xfd   : > { %v240_v26 = vpop.xlane.xlu1 %239 }
  0xfe   : > { %v234_v27 = vpop.xlane.xlu0 %233  ;;  %v258_v32 = vmul.f32 0.00390625, %v240_v26 }
  0xff   : > { %v256_v30 = vmul.f32 0.00390625, %v234_v27 }
 0x101   : > { %v243_v28 = vpop.xlane.xlu1 %242 }
 0x102   : > { %v237_v29 = vpop.xlane.xlu0 %236  ;;  %v259_v33 = vmul.f32 0.00390625, %v243_v28 }
 0x103   : > { %v257_v31 = vmul.f32 0.00390625, %v237_v29 }
 0x104   : > { %v801_v39 = vpack.c.bf16 %v259_v33, %v258_v32 }
 0x105   : > { %v798_v34 = vpack.c.bf16 %v257_v31, %v256_v30  ;;  %v249_v35 = vpop.xlane.xlu1 %248 }
 0x106   : > { %v246_v36 = vpop.xlane.xlu0 %245  ;;  %v261_v37 = vmul.f32 0.00390625, %v249_v35 }
 0x107   : > { %799 = vmatpush3.bf16.msra.mxu0 %v798_v34  ;;  %v260_v38 = vmul.f32 0.00390625, %v246_v36 }
 0x108   : > { %800 = vmatprep.subr.bf16.mxu0 %v1085_v24 }
 0x109   : > { %v255_v40 = vpop.xlane.xlu1 %254  ;;  %v804_v42 = vpack.c.bf16 %v261_v37, %v260_v38 }
 0x10a   : > { %v252_v41 = vpop.xlane.xlu0 %251  ;;  %v263_v43 = vmul.f32 0.00390625, %v255_v40 }
 0x10b   : > { %802 = vmatpush3.bf16.msra.mxu0 %v801_v39  ;;  %v262_v44 = vmul.f32 0.00390625, %v252_v41 }
 0x10c   : > { %803 = vmatprep.subr.bf16.mxu0 %v1085_v24 }
 0x10d   : > { %v807_v45 = vpack.c.bf16 %v263_v43, %v262_v44 }
 0x10f   : > { %805 = vmatpush3.bf16.msra.mxu0 %v804_v42 }
 0x110   : > { %806 = vmatprep.subr.bf16.mxu0 %v1085_v24 }
 0x113   : > { %808 = vmatpush3.bf16.msra.mxu0 %v807_v45 }
 0x116   : > { %781 = vmatmul.mubr.msk.f32.vlgmr.msra.gmra.mrb[0].mxu0 %vm265_vm1, %v264_v46 }
 0x1e9   : > { %v335_v48 = vpop.f32.mrb[0].mxu0 }
 0x1ea   : > { %v339_v49 = vmax.f32 %v335_v48, 0.0  ;;  %v782_v50 = vpop.f32.mrb[1].mxu0 }
 0x1ec   : > { %783 = vmatprep.subr.msk.mxu1 %vm373_vm3, %v339_v49 }
 0x1ed   : > { %784 = vmatpush3.msk.msra.mxu1 %vm373_vm3, %v339_v49 }
 0x1ee   : > { %786 = vmatmul.mubr.msk.f32.vlgmr.msra.gmra.mrb[0].mxu1 %vm348_vm2, %v341_v51 }
 0x1ef   : > { %788 = vmatprep.mubr.msk.f32.mxu1 %vm348_vm2, %v342_v52 }
 0x1f2   : > { %789 = vmatmul.mubr.msk.f32.gmra.mrb[2].mxu1 %vm348_vm2, %v343_v53 }
 0x1f3   : > { %791 = vmatprep.mubr.msk.f32.mxu1 %vm348_vm2, %v344_v54 }
 0x1f6   : > { %792 = vmatmul.mubr.msk.f32.gmra.mrb[4].mxu1 %vm348_vm2, %v345_v55 }
 0x1f7   : > { %794 = vmatprep.mubr.msk.f32.mxu1 %vm348_vm2, %v346_v56 }
 0x1fa   : > { %795 = vmatmul.mubr.msk.f32.gmra.mrb[6].mxu1 %vm348_vm2, %v347_v57 }
 0x2c1   : > { %v787_v59 = vpop.f32.mrb[0].mxu1 }
 0x2c2   : > { %v732_v60 = vmul.f32 -1.442695, %v787_v59  ;;  %v443_v61 = vpop.f32.mrb[1].mxu1 }
 0x2c3   : > { %v731_v62 = vmul.f32 -1.442695, %v443_v61 }
 0x2c4   : > { %888 = vpow2.f32 %v732_v60 }
 0x2c5   : > { %890 = vpow2.f32 %v731_v62  ;;  %v790_v63 = vpop.f32.mrb[2].mxu1 }
 0x2c6   : > { %v734_v3 = vmul.f32 -1.442695, %v790_v63  ;;  %v453_v7 = vpop.f32.mrb[3].mxu1 }
 0x2c7   : > { %v733_v10 = vmul.f32 -1.442695, %v453_v7 }
 0x2c8   : > { %892 = vpow2.f32 %v734_v3 }
 0x2c9   : > { %894 = vpow2.f32 %v733_v10  ;;  %v793_v11 = vpop.f32.mrb[4].mxu1 }
 0x2ca   : > { %v736_v16 = vmul.f32 -1.442695, %v793_v11  ;;  %v463_v17 = vpop.f32.mrb[5].mxu1 }
 0x2cb   : > { %v735_v22 = vmul.f32 -1.442695, %v463_v17 }
 0x2cc   : > { %896 = vpow2.f32 %v736_v16 }
 0x2cd   : > { %v796_v23 = vpop.f32.mrb[6].mxu1  ;;  %898 = vpow2.f32 %v735_v22 }
 0x2ce   : > { %v889_v24 = vpop.eup %888  ;;  %v473_v25 = vpop.f32.mrb[7].mxu1  ;;  %v738_v33 = vmul.f32 -1.442695, %v796_v23 }
 0x2cf   : > { %v891_v26 = vpop.eup %890  ;;  %v507_v27 = vadd.f32 1.0, %v889_v24  ;;  %v737_v28 = vmul.f32 -1.442695, %v473_v25 }
 0x2d0   : > { %v506_v29 = vadd.f32 1.0, %v891_v26 }
 0x2d1   : > { %900 = vrcp.f32 %v507_v27 }
 0x2d2   : > { %v893_v30 = vpop.eup %892  ;;  %902 = vrcp.f32 %v506_v29 }
 0x2d3   : > { %v895_v31 = vpop.eup %894  ;;  %v509_v32 = vadd.f32 1.0, %v893_v30  ;;  %904 = vpow2.f32 %v737_v28 }
 0x2d4   : > { %v508_v34 = vadd.f32 1.0, %v895_v31 }
 0x2d5   : > { %906 = vrcp.f32 %v509_v32 }
 0x2d6   : > { %v897_v35 = vpop.eup %896  ;;  %908 = vpow2.f32 %v738_v33 }
 0x2d7   : > { %v511_v36 = vadd.f32 1.0, %v897_v35  ;;  %910 = vrcp.f32 %v508_v34  ;;  %v899_v37 = vpop.eup %898 }
 0x2d8   : > { %v510_v41 = vadd.f32 1.0, %v899_v37 }
 0x2d9   : > { %912 = vrcp.f32 %v511_v36 }
 0x2da   : > { %914 = vrcp.f32 %v510_v41 }
 0x2db   : > { %v901_v38 = vpop.eup %900 }
 0x2dc   : > { %v903_v39 = vpop.eup %902  ;;  %537 = vperm.xlu1 %887, %v901_v38  }
 0x2dd   : > { %v905_v40 = vpop.eup %904  ;;  %532 = vperm.xlu0 %886, %v903_v39  }
 0x2de   : > { %v512_v43 = vadd.f32 1.0, %v905_v40 }
 0x2df   : > { %v907_v42 = vpop.eup %906 }
 0x2e0   : > { %547 = vperm.xlu1 %887, %v907_v42   ;;  %v909_v44 = vpop.eup %908  ;;  %916 = vrcp.f32 %v512_v43 }
 0x2e1   : > { %v911_v45 = vpop.eup %910  ;;  %v513_v47 = vadd.f32 1.0, %v909_v44 }
 0x2e3   : > { %v913_v46 = vpop.eup %912  ;;  %918 = vrcp.f32 %v513_v47 }
 0x2e4   : > { %542 = vperm.xlu1 %887, %v911_v45   ;;  %v915_v48 = vpop.eup %914 }
 0x2e8   : > { %557 = vperm.xlu1 %887, %v913_v46  }
 0x2ea   : > { %v917_v49 = vpop.eup %916 }
 0x2ec   : > { %552 = vperm.xlu1 %887, %v915_v48  }
 0x2ed   : > { %v919_v50 = vpop.eup %918 }
 0x2f0   : > { %562 = vperm.xlu1 %887, %v917_v49  }
 0x2f4   : > { %567 = vperm.xlu1 %887, %v919_v50  }
 0x35b   : > { %v538_v51 = vpop.permute.xlu1 %537 }
 0x35c   : > { %v572_v52 = vmul.f32 %v538_v51, %v1311_v8  ;;  %v573_v53 = vmul.f32 %v538_v51, %v1313_v9  ;;  %v533_v54 = vpop.permute.xlu0 %532 }
 0x35d   : > { %v570_v55 = vmul.f32 %v533_v54, %v1299_v2  ;;  %v571_v56 = vmul.f32 %v533_v54, %v1303_v4 }
 0x35e   : > { %588 = vst [vmem:[%s1357_s23 + $0x10] sm:$0xff] %v572_v52  ;;  %589 = vst [vmem:[%s1357_s23 + $0x18] sm:$0xff] %v573_v53 }
 0x35f   : > { %586 = vst [vmem:[%s1357_s23] sm:$0xff] %v570_v55  ;;  %587 = vst [vmem:[%s1357_s23 + $0x8] sm:$0xff] %v571_v56  ;;  %v548_v2 = vpop.permute.xlu1 %547 }
 0x360   : > { %v576_v4 = vmul.f32 %v548_v2, %v1305_v5  ;;  %v577_v8 = vmul.f32 %v548_v2, %v1307_v6 }
 0x362   : > { %592 = vst [vmem:[%s1357_s23 + $0x30] sm:$0xff] %v576_v4  ;;  %593 = vst [vmem:[%s1357_s23 + $0x38] sm:$0xff] %v577_v8 }
 0x363   : > { %v543_v9 = vpop.permute.xlu1 %542 }
 0x364   : > { %v574_v57 = vmul.f32 %v543_v9, %v1295_v0  ;;  %v575_v58 = vmul.f32 %v543_v9, %v1297_v1 }
 0x366   : > { %590 = vst [vmem:[%s1357_s23 + $0x20] sm:$0xff] %v574_v57  ;;  %591 = vst [vmem:[%s1357_s23 + $0x28] sm:$0xff] %v575_v58 }
 0x367   : > { %v558_v59 = vpop.permute.xlu1 %557 }
 0x368   : > { %v580_v5 = vmul.f32 %v558_v59, %v1319_v12  ;;  %v581_v6 = vmul.f32 %v558_v59, %v1321_v13 }
 0x36a   : > { %596 = vst [vmem:[%s1357_s23 + $0x50] sm:$0xff] %v580_v5  ;;  %597 = vst [vmem:[%s1357_s23 + $0x58] sm:$0xff] %v581_v6 }
 0x36b   : > { %v553_v60 = vpop.permute.xlu1 %552 }
 0x36c   : > { %v578_v61 = vmul.f32 %v553_v60, %v1323_v14  ;;  %v579_v0 = vmul.f32 %v553_v60, %v1325_v15 }
 0x36e   : > { %594 = vst [vmem:[%s1357_s23 + $0x40] sm:$0xff] %v578_v61  ;;  %595 = vst [vmem:[%s1357_s23 + $0x48] sm:$0xff] %v579_v0 }
 0x36f   : > { %v563_v1 = vpop.permute.xlu1 %562 }
 0x370   : > { %v582_v62 = vmul.f32 %v563_v1, %v1335_v20  ;;  %v583_v12 = vmul.f32 %v563_v1, %v1337_v21 }
 0x372   : > { %598 = vst [vmem:[%s1357_s23 + $0x60] sm:$0xff] %v582_v62  ;;  %599 = vst [vmem:[%s1357_s23 + $0x68] sm:$0xff] %v583_v12 }
 0x373   : > { %v568_v13 = vpop.permute.xlu1 %567 }
 0x374   : > { %v584_v14 = vmul.f32 %v568_v13, %v1331_v18  ;;  %v585_v15 = vmul.f32 %v568_v13, %v1333_v19 }
 0x376   : > { %600 = vst [vmem:[%s1357_s23 + $0x70] sm:$0xff] %v584_v14  ;;  %601 = vst [vmem:[%s1357_s23 + $0x78] sm:$0xff] %v585_v15 }
 0x377   : > { %1019 = shalt.err (!%p1016_p6)
}
 0x378   : > { %s1020_s6 = scalar_lea.hbm %s1388_s29, 2048  ;;  %s1024_s10 = scalar_lea.hbm %s1441_s3, 4096 }
 0x379   : > { %p1021_p12 = scmp.ne.s32.totalorder %s1388_s29, %s1020_s6  ;;  %p1025_p11 = scmp.lt.u32.totalorder %s1388_s29, %s1441_s3 }
 0x37a   : > { %p1026_p7 = scmp.lt.u32.totalorder %s1024_s10, %s1020_s6  ;;  %p1028_p8 = scmp.lt.u32.totalorder %s1020_s6, %s1388_s29 }
 0x37b   : > { %p1022_p13 = pnand %p1021_p12, %p1460_p4 }
 0x37c   : > { %p1027_p3 = por %p1026_p7, %p1025_p11 }
 0x37d   : > { %p1023_p1 = pneg %p1022_p13 }
 0x37e   : > { %p1029_p5 = por %p1028_p8, %p1027_p3 }
 0x380   : > { %p1030_p10 = pnand %p1029_p5, %p1023_p1 }
 0x382   : > { %1033 = shalt.err (!%p1030_p10)
}
 0x383   : > { %s1090_s19 = smov 256   ;;  %s1091_s23 = smov 16  }
 0x384   : > { %819 = dma.vmem_to_hbm [thread:$0]  (%p1460_p4), %s1390_s30, 2048, %s1388_s29, %s603_s16, %s1090_s19, %s1090_s19, %s1091_s23  }
 0x385 PF: > { %s631_s26 = sand.u32 1, %s1064_s12   ;;  %p1461_p2 = scmp.ne.s32.totalorder %s1450_s25, 0 }
 0x386   : > { %p1462_p0 = scmp.ge.s32.totalorder %s1076_s15, 2  ;;  %s632_s9 = scalar_lea.sflag [#allocation4], %s631_s26 }
 0x388   : > { %p833_p9 = pnand %p1462_p0, %p1461_p2 }
 0x38a   : > { %1059 = dma.done.wait (!%p833_p9), %s632_s9, 2048  }
 0x38b   : > { %1061 = vsyncadd (!%p833_p9), %s632_s9, 4294965248  ;;  %p17_p6 = scmp.ge.s32.totalorder %s1137_s18, 4   ;;  %s1463_s12 = smov %s1068_s13 }
 0x38c   : > { %s1464_s13 = smov %s1072_s14  ;;  %s1465_s14 = smov %s1149_s21 }
 0x38d   : > { %s1466_s15 = smov %s1137_s18  ;;  %19 = sbr.rel (!%p17_p6) target bundleno = 6 (0x6), region = 85 }
 0x394   :  { %637 = vsyncpa [#allocation3], 1 }
 0x395   :  { %639 = vsyncpa [#allocation3 + $0x1], 1 }
 0x396   :  { %640 = vsyncpa [#allocation6], 1 }
 0x397   :  { %641 = vsyncpa [#allocation4], 1 }
 0x398   :  { %643 = vsyncpa [#allocation4 + $0x1], 1 }

</bundles_post_ra>
